<compile_context>
chip_gen: v7x
topology: tpu7x:2x2x1
jax: 0.10.0
libtpu: 0.0.40
codegen_flags: <defaults>
</compile_context>

<pallas_src>
from functools import partial

import jax
import jax.numpy as jnp
from jax import lax
from jax.experimental import pallas as pl
from jax.experimental.pallas import tpu as pltpu


def _round_up(x, m):
    return ((x + m - 1) // m) * m


def _pick_heads_per_step(num_heads, head_dim, target_lanes=256):
    """Largest divisor of num_heads whose fused width TH*D fits the MXU tile
    target (256 lanes on v6e/v7x; also fine on v5e's 128-wide MXU)."""
    best = 1
    for th in range(1, num_heads + 1):
        if num_heads % th == 0 and th * head_dim <= max(target_lanes, head_dim):
            best = th
    return best


def _attention_kernel(x_ref, wq_ref, wk_ref, wv_ref, wp_ref, bp_ref,
                      o_ref, acc_ref, *,
                      heads_per_step, head_dim, num_groups, seq_len, seq_pad):
    """One grid step = one (batch, head-group) pair.

    x_ref  : (1, Np, C)        activations (compute dtype)
    wq_ref : (G, C, TH*D)      resident per-group Q weights (scale folded in)
    wk_ref : (G, C, TH*D)      resident per-group K weights
    wv_ref : (G, C, TH*D)      resident per-group V weights
    wp_ref : (G, TH*D, C)      resident per-group slices of proj weight (pre-T)
    bp_ref : (1, C) f32        proj bias
    o_ref  : (1, Np, C)        output block (revisited across the group axis)
    acc_ref: (Np, C) f32       VMEM accumulator across head groups
    """
    g = pl.program_id(1)
    TH, D = heads_per_step, head_dim

    x = x_ref[0]                      # (Np, C), native/compute dtype to MXU
    cdt = x.dtype

    # Fused QKV projection for TH heads at once: lane-dense (Np, TH*D) tiles,
    # f32 accumulation on the MXU.  Softmax scale is already folded into Wq.
    q = jnp.dot(x, wq_ref[g], preferred_element_type=jnp.float32)
    k = jnp.dot(x, wk_ref[g], preferred_element_type=jnp.float32)
    v = jnp.dot(x, wv_ref[g], preferred_element_type=jnp.float32)

    if seq_pad != seq_len:            # static: mask padded key columns
        col_ids = lax.broadcasted_iota(jnp.int32, (1, seq_pad), 1)
        key_pad_mask = col_ids >= seq_len
    else:
        key_pad_mask = None

    # Per-head attention, unrolled over the (small, static) TH heads so only
    # one (Np, Np) score tile is live at a time.
    o_parts = []
    for h in range(TH):
        q_h = q[:, h * D:(h + 1) * D].astype(cdt)   # (Np, D)
        k_h = k[:, h * D:(h + 1) * D].astype(cdt)   # (Np, D)
        v_h = v[:, h * D:(h + 1) * D].astype(cdt)   # (Np, D)

        # q @ k.T via dot_general contracting last dims (no explicit k.T).
        s = lax.dot_general(q_h, k_h,
                            dimension_numbers=(((1,), (1,)), ((), ())),
                            preferred_element_type=jnp.float32)   # (Np, Np)
        if key_pad_mask is not None:
            s = jnp.where(key_pad_mask, -1e30, s)

        s = s - jnp.max(s, axis=-1, keepdims=True)
        p = jnp.exp(s)
        l = jnp.sum(p, axis=-1, keepdims=True)                    # (Np, 1)
        o_h = jnp.dot(p.astype(cdt), v_h,
                      preferred_element_type=jnp.float32)         # (Np, D)
        # Post-normalize on the (Np, D) output instead of the (Np, Np) probs.
        o_h = o_h * pl.reciprocal(l, approx=True)
        o_parts.append(o_h)

    o_g = jnp.concatenate(o_parts, axis=-1) if TH > 1 else o_parts[0]  # (Np, TH*D)

    # Output projection, accumulated group-by-group into the f32 scratch.
    @pl.when(g == 0)
    def _():
        acc_ref[...] = jnp.zeros_like(acc_ref)

    acc_ref[...] += jnp.dot(o_g.astype(cdt), wp_ref[g],
                            preferred_element_type=jnp.float32)   # (Np, C)

    @pl.when(g == num_groups - 1)
    def _():
        o_ref[0] = (acc_ref[...] + bp_ref[...]).astype(o_ref.dtype)


def attention_forward(x, w_qkv, w_proj, b_proj, *, num_heads, compute_dtype=None):
    B, N, C = x.shape
    assert C % num_heads == 0, "dim must be divisible by num_heads"
    D = C // num_heads
    scale = D ** (-0.5)

    cdt = jnp.dtype(compute_dtype) if compute_dtype is not None else x.dtype
    x_c = x.astype(cdt)

    TH = _pick_heads_per_step(num_heads, D)       # heads batched per grid step
    G = num_heads // TH

    # Pad the token dim so the (Np, Np) score tile / reductions are dense.
    Np = _round_up(N, 128) if N > 128 else _round_up(N, 8)
    if Np != N:
        x_c = jnp.pad(x_c, ((0, 0), (0, Np - N), (0, 0)))

    # One-time wrapper-side weight preparation (layout only).
    # w_qkv rows are ordered [part, head, d] -> (3, H, D, C).
    w = w_qkv.reshape(3, num_heads, D, C)

    def group_fmt(wpart):  # (H, D, C) -> (G, C, TH*D), qkv = x @ W (no .T)
        return jnp.transpose(wpart.reshape(G, TH, D, C), (0, 3, 1, 2)).reshape(G, C, TH * D)

    wq = (group_fmt(w[0]) * scale).astype(cdt)    # softmax scale folded into Wq
    wk = group_fmt(w[1]).astype(cdt)
    wv = group_fmt(w[2]).astype(cdt)
    # proj: out = sum_g o_g @ w_proj.T[g*TH*D:(g+1)*TH*D, :]
    wp = jnp.transpose(w_proj).reshape(G, TH * D, C).astype(cdt)
    bp = b_proj.astype(jnp.float32).reshape(1, C)

    kernel = partial(_attention_kernel,
                     heads_per_step=TH, head_dim=D, num_groups=G,
                     seq_len=N, seq_pad=Np)

    # Advisory cost estimate reflecting the resident-weight layout.
    itemsize = jnp.dtype(cdt).itemsize
    flops = B * (6 * Np * C * C                   # qkv projection
                 + 4 * num_heads * Np * Np * D    # q@k.T and p@v
                 + 2 * Np * C * C)                # output projection
    cost = pl.CostEstimate(
        flops=flops,
        transcendentals=B * num_heads * Np * Np,
        bytes_accessed=(2 * B * Np * C + 4 * C * C) * itemsize + 4 * C,
    )

    # VMEM budget: ~3/4 of physical (48 MiB ceiling on v7x's 64 MiB, up to
    # 96 MiB on v5e/v6e's 128 MiB).
    try:
        vmem_cap = pltpu.get_tpu_info().vmem_capacity_bytes
    except Exception:
        vmem_cap = 128 * 1024 * 1024
    vmem_limit = int(min(96 * 1024 * 1024, (vmem_cap * 3) // 4))

    out = pl.pallas_call(
        kernel,
        out_shape=jax.ShapeDtypeStruct((B, Np, C), cdt),
        grid_spec=pltpu.PrefetchScalarGridSpec(
            num_scalar_prefetch=0,
            grid=(B, G),                          # head-group axis is a reduction
            in_specs=[
                pl.BlockSpec((1, Np, C), lambda b, g: (b, 0, 0)),       # x
                pl.BlockSpec((G, C, TH * D), lambda b, g: (0, 0, 0)),   # Wq resident
                pl.BlockSpec((G, C, TH * D), lambda b, g: (0, 0, 0)),   # Wk resident
                pl.BlockSpec((G, C, TH * D), lambda b, g: (0, 0, 0)),   # Wv resident
                pl.BlockSpec((G, TH * D, C), lambda b, g: (0, 0, 0)),   # Wproj resident
                pl.BlockSpec((1, C), lambda b, g: (0, 0)),              # proj bias
            ],
            out_specs=pl.BlockSpec((1, Np, C), lambda b, g: (b, 0, 0)),
            scratch_shapes=[pltpu.VMEM((Np, C), jnp.float32)],          # head-group acc
        ),
        compiler_params=pltpu.CompilerParams(
            dimension_semantics=("parallel", "arbitrary"),
            vmem_limit_bytes=vmem_limit,
        ),
        cost_estimate=cost,
    )(x_c, wq, wk, wv, wp, bp)

    if Np != N:
        out = out[:, :N, :]
    return out


def _reference_forward(x, w_qkv, w_proj, b_proj, *, num_heads):
    """Plain-JAX replica of the PyTorch forward for correctness checking."""
    B, N, C = x.shape
    D = C // num_heads
    scale = D ** (-0.5)
    qkv = jnp.einsum('bnc,oc->bno', x, w_qkv)                 # (B, N, 3C)
    qkv = qkv.reshape(B, N, 3, num_heads, D).transpose(2, 0, 3, 1, 4)
    q, k, v = qkv[0], qkv[1], qkv[2]                          # (B, H, N, D)
    attn = jnp.einsum('bhnd,bhmd->bhnm', q * scale, k)
    attn = jax.nn.softmax(attn, axis=-1)
    o = jnp.einsum('bhnm,bhmd->bhnd', attn, v)
    o = o.transpose(0, 2, 1, 3).reshape(B, N, C)
    return jnp.einsum('bnc,oc->bno', o, w_proj) + b_proj[None, None, :]


if __name__ == "__main__":
    num_heads = 4
    key = jax.random.PRNGKey(0)
    kx, kqkv, kproj, kb, kx2 = jax.random.split(key, 5)

    B, N, C = 2, 8, 32
    x = jax.random.normal(kx, (B, N, C), dtype=jnp.float32)
    w_qkv = 0.02 * jax.random.normal(kqkv, (3 * C, C), dtype=jnp.float32)
    w_proj = 0.02 * jax.random.normal(kproj, (C, C), dtype=jnp.float32)
    b_proj = 0.02 * jax.random.normal(kb, (C,), dtype=jnp.float32)

    # f32 path (tight tolerance; only the approx EUP reciprocal differs).
    out = jax.block_until_ready(
        attention_forward(x, w_qkv, w_proj, b_proj, num_heads=num_heads))
    ref = _reference_forward(x, w_qkv, w_proj, b_proj, num_heads=num_heads)
    assert out.shape == (B, N, C)
    assert jnp.allclose(out, ref, atol=1e-3, rtol=1e-3), "mismatch vs reference"

    # Token-padding + key-mask path (N not a multiple of 8 -> padded to 16).
    N2 = 10
    x2 = jax.random.normal(kx2, (B, N2, C), dtype=jnp.float32)
    out2 = jax.block_until_ready(
        attention_forward(x2, w_qkv, w_proj, b_proj, num_heads=num_heads))
    ref2 = _reference_forward(x2, w_qkv, w_proj, b_proj, num_heads=num_heads)
    assert out2.shape == (B, N2, C)
    assert jnp.allclose(out2, ref2, atol=1e-3, rtol=1e-3), "mismatch (padded path)"

    # Production mixed-precision path: bf16 operands, f32 MXU accumulation.
    out_bf16 = jax.block_until_ready(
        attention_forward(x, w_qkv, w_proj, b_proj, num_heads=num_heads,
                          compute_dtype=jnp.bfloat16))
    assert jnp.allclose(out_bf16.astype(jnp.float32), ref, atol=2e-2, rtol=2e-1), \
        "mismatch (bf16 path)"

    print("KERNEL_OK")
</pallas_src>

<mosaic_0001>
module attributes {stable_mosaic.version = 11 : i64} {
  func.func @_attention_kernel(%arg0: i32, %arg1: i32, %arg2: memref<1x8x32xf32, #tpu.memory_space<vmem>>, %arg3: memref<1x32x32xf32, #tpu.memory_space<vmem>>, %arg4: memref<1x32x32xf32, #tpu.memory_space<vmem>>, %arg5: memref<1x32x32xf32, #tpu.memory_space<vmem>>, %arg6: memref<1x32x32xf32, #tpu.memory_space<vmem>>, %arg7: memref<1x32xf32, #tpu.memory_space<vmem>>, %arg8: memref<1x8x32xf32, #tpu.memory_space<vmem>>, %arg9: memref<8x32xf32, #tpu.memory_space<vmem>>) attributes {dimension_semantics = [#tpu.dimension_semantics<parallel>, #tpu.dimension_semantics<arbitrary>], iteration_bounds = array<i64: 2, 1>, scalar_prefetch = 0 : i64, scratch_operands = 1 : i64, tpu.core_type = #tpu.core_type<tc>, window_params = [{transform_indices = @transform_0, window_bounds = array<i64: 1, 8, 32>}, {pipeline_mode = #tpu.pipeline_mode<synchronous>, transform_indices = @transform_1, window_bounds = array<i64: 1, 32, 32>}, {pipeline_mode = #tpu.pipeline_mode<synchronous>, transform_indices = @transform_2, window_bounds = array<i64: 1, 32, 32>}, {pipeline_mode = #tpu.pipeline_mode<synchronous>, transform_indices = @transform_3, window_bounds = array<i64: 1, 32, 32>}, {pipeline_mode = #tpu.pipeline_mode<synchronous>, transform_indices = @transform_4, window_bounds = array<i64: 1, 32, 32>}, {pipeline_mode = #tpu.pipeline_mode<synchronous>, transform_indices = @transform_5, window_bounds = array<i64: 1, 32>}, {transform_indices = @transform_6, window_bounds = array<i64: 1, 8, 32>}]} {
    %c0 = arith.constant 0 : index
    %c0_0 = arith.constant 0 : index
    %c0_1 = arith.constant 0 : index
    %0 = vector.load %arg2[%c0, %c0_0, %c0_1] : memref<1x8x32xf32, #tpu.memory_space<vmem>>, vector<1x8x32xf32>
    %1 = vector.shape_cast %0 : vector<1x8x32xf32> to vector<8x32xf32>
    %2 = arith.index_cast %arg1 : i32 to index
    %c0_2 = arith.constant 0 : index
    %c0_3 = arith.constant 0 : index
    %3 = vector.load %arg3[%2, %c0_2, %c0_3] : memref<1x32x32xf32, #tpu.memory_space<vmem>>, vector<1x32x32xf32>
    %4 = vector.shape_cast %3 : vector<1x32x32xf32> to vector<32x32xf32>
    %cst = arith.constant dense<0.000000e+00> : vector<8x32xf32>
    %5 = tpu.matmul %1, %4, %cst {dimension_numbers = #tpu.dot_dimension_numbers<[1], [0], [0], [1], [0, 0, 1, 1], [], []>} : vector<8x32xf32>, vector<32x32xf32>, vector<8x32xf32> -> vector<8x32xf32>
    %6 = arith.index_cast %arg1 : i32 to index
    %c0_4 = arith.constant 0 : index
    %c0_5 = arith.constant 0 : index
    %7 = vector.load %arg4[%6, %c0_4, %c0_5] : memref<1x32x32xf32, #tpu.memory_space<vmem>>, vector<1x32x32xf32>
    %8 = vector.shape_cast %7 : vector<1x32x32xf32> to vector<32x32xf32>
    %cst_6 = arith.constant dense<0.000000e+00> : vector<8x32xf32>
    %9 = tpu.matmul %1, %8, %cst_6 {dimension_numbers = #tpu.dot_dimension_numbers<[1], [0], [0], [1], [0, 0, 1, 1], [], []>} : vector<8x32xf32>, vector<32x32xf32>, vector<8x32xf32> -> vector<8x32xf32>
    %10 = arith.index_cast %arg1 : i32 to index
    %c0_7 = arith.constant 0 : index
    %c0_8 = arith.constant 0 : index
    %11 = vector.load %arg5[%10, %c0_7, %c0_8] : memref<1x32x32xf32, #tpu.memory_space<vmem>>, vector<1x32x32xf32>
    %12 = vector.shape_cast %11 : vector<1x32x32xf32> to vector<32x32xf32>
    %cst_9 = arith.constant dense<0.000000e+00> : vector<8x32xf32>
    %13 = tpu.matmul %1, %12, %cst_9 {dimension_numbers = #tpu.dot_dimension_numbers<[1], [0], [0], [1], [0, 0, 1, 1], [], []>} : vector<8x32xf32>, vector<32x32xf32>, vector<8x32xf32> -> vector<8x32xf32>
    %14 = vector.extract_strided_slice %5 {offsets = [0, 0], sizes = [8, 8], strides = [1, 1]} : vector<8x32xf32> to vector<8x8xf32>
    %15 = vector.extract_strided_slice %9 {offsets = [0, 0], sizes = [8, 8], strides = [1, 1]} : vector<8x32xf32> to vector<8x8xf32>
    %16 = vector.extract_strided_slice %13 {offsets = [0, 0], sizes = [8, 8], strides = [1, 1]} : vector<8x32xf32> to vector<8x8xf32>
    %cst_10 = arith.constant dense<0.000000e+00> : vector<8x8xf32>
    %17 = tpu.matmul %14, %15, %cst_10 {dimension_numbers = #tpu.dot_dimension_numbers<[1], [1], [0], [0], [0, 0, 1, 0], [], []>} : vector<8x8xf32>, vector<8x8xf32>, vector<8x8xf32> -> vector<8x8xf32>
    %cst_11 = arith.constant dense<0xFF800000> : vector<8xf32>
    %18 = vector.multi_reduction <maximumf>, %17, %cst_11 [1] : vector<8x8xf32> to vector<8xf32>
    %19 = vector.shape_cast %18 : vector<8xf32> to vector<8x1xf32>
    %20 = vector.broadcast %19 : vector<8x1xf32> to vector<8x8xf32>
    %21 = arith.subf %17, %20 : vector<8x8xf32>
    %22 = math.exp %21 : vector<8x8xf32>
    %cst_12 = arith.constant dense<0.000000e+00> : vector<8xf32>
    %23 = vector.multi_reduction <add>, %22, %cst_12 [1] : vector<8x8xf32> to vector<8xf32>
    %24 = vector.shape_cast %23 : vector<8xf32> to vector<8x1xf32>
    %cst_13 = arith.constant dense<0.000000e+00> : vector<8x8xf32>
    %25 = tpu.matmul %22, %16, %cst_13 {dimension_numbers = #tpu.dot_dimension_numbers<[1], [0], [0], [1], [0, 0, 1, 1], [], []>} : vector<8x8xf32>, vector<8x8xf32>, vector<8x8xf32> -> vector<8x8xf32>
    %26 = tpu.reciprocal %24 {approx = true} : vector<8x1xf32> -> vector<8x1xf32>
    %27 = vector.broadcast %26 : vector<8x1xf32> to vector<8x8xf32>
    %28 = arith.mulf %25, %27 : vector<8x8xf32>
    %29 = vector.extract_strided_slice %5 {offsets = [0, 8], sizes = [8, 8], strides = [1, 1]} : vector<8x32xf32> to vector<8x8xf32>
    %30 = vector.extract_strided_slice %9 {offsets = [0, 8], sizes = [8, 8], strides = [1, 1]} : vector<8x32xf32> to vector<8x8xf32>
    %31 = vector.extract_strided_slice %13 {offsets = [0, 8], sizes = [8, 8], strides = [1, 1]} : vector<8x32xf32> to vector<8x8xf32>
    %cst_14 = arith.constant dense<0.000000e+00> : vector<8x8xf32>
    %32 = tpu.matmul %29, %30, %cst_14 {dimension_numbers = #tpu.dot_dimension_numbers<[1], [1], [0], [0], [0, 0, 1, 0], [], []>} : vector<8x8xf32>, vector<8x8xf32>, vector<8x8xf32> -> vector<8x8xf32>
    %cst_15 = arith.constant dense<0xFF800000> : vector<8xf32>
    %33 = vector.multi_reduction <maximumf>, %32, %cst_15 [1] : vector<8x8xf32> to vector<8xf32>
    %34 = vector.shape_cast %33 : vector<8xf32> to vector<8x1xf32>
    %35 = vector.broadcast %34 : vector<8x1xf32> to vector<8x8xf32>
    %36 = arith.subf %32, %35 : vector<8x8xf32>
    %37 = math.exp %36 : vector<8x8xf32>
    %cst_16 = arith.constant dense<0.000000e+00> : vector<8xf32>
    %38 = vector.multi_reduction <add>, %37, %cst_16 [1] : vector<8x8xf32> to vector<8xf32>
    %39 = vector.shape_cast %38 : vector<8xf32> to vector<8x1xf32>
    %cst_17 = arith.constant dense<0.000000e+00> : vector<8x8xf32>
    %40 = tpu.matmul %37, %31, %cst_17 {dimension_numbers = #tpu.dot_dimension_numbers<[1], [0], [0], [1], [0, 0, 1, 1], [], []>} : vector<8x8xf32>, vector<8x8xf32>, vector<8x8xf32> -> vector<8x8xf32>
    %41 = tpu.reciprocal %39 {approx = true} : vector<8x1xf32> -> vector<8x1xf32>
    %42 = vector.broadcast %41 : vector<8x1xf32> to vector<8x8xf32>
    %43 = arith.mulf %40, %42 : vector<8x8xf32>
    %44 = vector.extract_strided_slice %5 {offsets = [0, 16], sizes = [8, 8], strides = [1, 1]} : vector<8x32xf32> to vector<8x8xf32>
    %45 = vector.extract_strided_slice %9 {offsets = [0, 16], sizes = [8, 8], strides = [1, 1]} : vector<8x32xf32> to vector<8x8xf32>
    %46 = vector.extract_strided_slice %13 {offsets = [0, 16], sizes = [8, 8], strides = [1, 1]} : vector<8x32xf32> to vector<8x8xf32>
    %cst_18 = arith.constant dense<0.000000e+00> : vector<8x8xf32>
    %47 = tpu.matmul %44, %45, %cst_18 {dimension_numbers = #tpu.dot_dimension_numbers<[1], [1], [0], [0], [0, 0, 1, 0], [], []>} : vector<8x8xf32>, vector<8x8xf32>, vector<8x8xf32> -> vector<8x8xf32>
    %cst_19 = arith.constant dense<0xFF800000> : vector<8xf32>
    %48 = vector.multi_reduction <maximumf>, %47, %cst_19 [1] : vector<8x8xf32> to vector<8xf32>
    %49 = vector.shape_cast %48 : vector<8xf32> to vector<8x1xf32>
    %50 = vector.broadcast %49 : vector<8x1xf32> to vector<8x8xf32>
    %51 = arith.subf %47, %50 : vector<8x8xf32>
    %52 = math.exp %51 : vector<8x8xf32>
    %cst_20 = arith.constant dense<0.000000e+00> : vector<8xf32>
    %53 = vector.multi_reduction <add>, %52, %cst_20 [1] : vector<8x8xf32> to vector<8xf32>
    %54 = vector.shape_cast %53 : vector<8xf32> to vector<8x1xf32>
    %cst_21 = arith.constant dense<0.000000e+00> : vector<8x8xf32>
    %55 = tpu.matmul %52, %46, %cst_21 {dimension_numbers = #tpu.dot_dimension_numbers<[1], [0], [0], [1], [0, 0, 1, 1], [], []>} : vector<8x8xf32>, vector<8x8xf32>, vector<8x8xf32> -> vector<8x8xf32>
    %56 = tpu.reciprocal %54 {approx = true} : vector<8x1xf32> -> vector<8x1xf32>
    %57 = vector.broadcast %56 : vector<8x1xf32> to vector<8x8xf32>
    %58 = arith.mulf %55, %57 : vector<8x8xf32>
    %59 = vector.extract_strided_slice %5 {offsets = [0, 24], sizes = [8, 8], strides = [1, 1]} : vector<8x32xf32> to vector<8x8xf32>
    %60 = vector.extract_strided_slice %9 {offsets = [0, 24], sizes = [8, 8], strides = [1, 1]} : vector<8x32xf32> to vector<8x8xf32>
    %61 = vector.extract_strided_slice %13 {offsets = [0, 24], sizes = [8, 8], strides = [1, 1]} : vector<8x32xf32> to vector<8x8xf32>
    %cst_22 = arith.constant dense<0.000000e+00> : vector<8x8xf32>
    %62 = tpu.matmul %59, %60, %cst_22 {dimension_numbers = #tpu.dot_dimension_numbers<[1], [1], [0], [0], [0, 0, 1, 0], [], []>} : vector<8x8xf32>, vector<8x8xf32>, vector<8x8xf32> -> vector<8x8xf32>
    %cst_23 = arith.constant dense<0xFF800000> : vector<8xf32>
    %63 = vector.multi_reduction <maximumf>, %62, %cst_23 [1] : vector<8x8xf32> to vector<8xf32>
    %64 = vector.shape_cast %63 : vector<8xf32> to vector<8x1xf32>
    %65 = vector.broadcast %64 : vector<8x1xf32> to vector<8x8xf32>
    %66 = arith.subf %62, %65 : vector<8x8xf32>
    %67 = math.exp %66 : vector<8x8xf32>
    %cst_24 = arith.constant dense<0.000000e+00> : vector<8xf32>
    %68 = vector.multi_reduction <add>, %67, %cst_24 [1] : vector<8x8xf32> to vector<8xf32>
    %69 = vector.shape_cast %68 : vector<8xf32> to vector<8x1xf32>
    %cst_25 = arith.constant dense<0.000000e+00> : vector<8x8xf32>
    %70 = tpu.matmul %67, %61, %cst_25 {dimension_numbers = #tpu.dot_dimension_numbers<[1], [0], [0], [1], [0, 0, 1, 1], [], []>} : vector<8x8xf32>, vector<8x8xf32>, vector<8x8xf32> -> vector<8x8xf32>
    %71 = tpu.reciprocal %69 {approx = true} : vector<8x1xf32> -> vector<8x1xf32>
    %72 = vector.broadcast %71 : vector<8x1xf32> to vector<8x8xf32>
    %73 = arith.mulf %70, %72 : vector<8x8xf32>
    %74 = tpu.concatenate %28, %43, %58, %73 in 1 : vector<8x8xf32>, vector<8x8xf32>, vector<8x8xf32>, vector<8x8xf32> -> vector<8x32xf32>
    %c0_i32 = arith.constant 0 : i32
    %75 = arith.cmpi eq, %arg1, %c0_i32 : i32
    %76 = arith.extui %75 : i1 to i32
    %c0_i32_26 = arith.constant 0 : i32
    %77 = arith.cmpi ne, %76, %c0_i32_26 : i32
    scf.if %77 {
      %cst_36 = arith.constant 0.000000e+00 : f32
      %88 = vector.broadcast %cst_36 : f32 to vector<8x32xf32>
      %c0_37 = arith.constant 0 : index
      %c0_38 = arith.constant 0 : index
      %89 = vector.load %arg9[%c0_37, %c0_38] : memref<8x32xf32, #tpu.memory_space<vmem>>, vector<8x32xf32>
      tpu.vector_store %arg9[%c0_37, %c0_38], %88 {strides = array<i32>} : memref<8x32xf32, #tpu.memory_space<vmem>>, vector<8x32xf32>,
    } else {
    }
    %c0_27 = arith.constant 0 : index
    %c0_28 = arith.constant 0 : index
    %78 = vector.load %arg9[%c0_27, %c0_28] : memref<8x32xf32, #tpu.memory_space<vmem>>, vector<8x32xf32>
    %79 = arith.index_cast %arg1 : i32 to index
    %c0_29 = arith.constant 0 : index
    %c0_30 = arith.constant 0 : index
    %80 = vector.load %arg6[%79, %c0_29, %c0_30] : memref<1x32x32xf32, #tpu.memory_space<vmem>>, vector<1x32x32xf32>
    %81 = vector.shape_cast %80 : vector<1x32x32xf32> to vector<32x32xf32>
    %cst_31 = arith.constant dense<0.000000e+00> : vector<8x32xf32>
    %82 = tpu.matmul %74, %81, %cst_31 {dimension_numbers = #tpu.dot_dimension_numbers<[1], [0], [0], [1], [0, 0, 1, 1], [], []>} : vector<8x32xf32>, vector<32x32xf32>, vector<8x32xf32> -> vector<8x32xf32>
    %83 = arith.addf %78, %82 : vector<8x32xf32>
    %c0_32 = arith.constant 0 : index
    %c0_33 = arith.constant 0 : index
    %84 = vector.load %arg9[%c0_32, %c0_33] : memref<8x32xf32, #tpu.memory_space<vmem>>, vector<8x32xf32>
    tpu.vector_store %arg9[%c0_32, %c0_33], %83 {strides = array<i32>} : memref<8x32xf32, #tpu.memory_space<vmem>>, vector<8x32xf32>,
    %c0_i32_34 = arith.constant 0 : i32
    %85 = arith.cmpi eq, %arg1, %c0_i32_34 : i32
    %86 = arith.extui %85 : i1 to i32
    %c0_i32_35 = arith.constant 0 : i32
    %87 = arith.cmpi ne, %86, %c0_i32_35 : i32
    scf.if %87 {
      %c0_36 = arith.constant 0 : index
      %c0_37 = arith.constant 0 : index
      %88 = vector.load %arg9[%c0_36, %c0_37] : memref<8x32xf32, #tpu.memory_space<vmem>>, vector<8x32xf32>
      %c0_38 = arith.constant 0 : index
      %c0_39 = arith.constant 0 : index
      %89 = vector.load %arg7[%c0_38, %c0_39] : memref<1x32xf32, #tpu.memory_space<vmem>>, vector<1x32xf32>
      %90 = vector.broadcast %89 : vector<1x32xf32> to vector<8x32xf32>
      %91 = arith.addf %88, %90 : vector<8x32xf32>
      %c0_40 = arith.constant 0 : index
      %c0_41 = arith.constant 0 : index
      %c0_42 = arith.constant 0 : index
      %92 = vector.load %arg8[%c0_40, %c0_41, %c0_42] : memref<1x8x32xf32, #tpu.memory_space<vmem>>, vector<1x8x32xf32>
      %93 = vector.shape_cast %92 : vector<1x8x32xf32> to vector<8x32xf32>
      %94 = vector.shape_cast %91 : vector<8x32xf32> to vector<1x8x32xf32>
      tpu.vector_store %arg8[%c0_40, %c0_41, %c0_42], %94 {strides = array<i32>} : memref<1x8x32xf32, #tpu.memory_space<vmem>>, vector<1x8x32xf32>,
    } else {
    }
    return
  }
  func.func @transform_0(%arg0: i32, %arg1: i32) -> (i32, i32, i32) {
    %c0_i32 = arith.constant 0 : i32
    %c0_i32_0 = arith.constant 0 : i32
    %c0_i32_1 = arith.constant 0 : i32
    return %arg0, %c0_i32, %c0_i32_0 : i32, i32, i32
  }
  func.func @transform_1(%arg0: i32, %arg1: i32) -> (i32, i32, i32) {
    %c0_i32 = arith.constant 0 : i32
    %c0_i32_0 = arith.constant 0 : i32
    %c0_i32_1 = arith.constant 0 : i32
    %c0_i32_2 = arith.constant 0 : i32
    return %c0_i32, %c0_i32_0, %c0_i32_1 : i32, i32, i32
  }
  func.func @transform_2(%arg0: i32, %arg1: i32) -> (i32, i32, i32) {
    %c0_i32 = arith.constant 0 : i32
    %c0_i32_0 = arith.constant 0 : i32
    %c0_i32_1 = arith.constant 0 : i32
    %c0_i32_2 = arith.constant 0 : i32
    return %c0_i32, %c0_i32_0, %c0_i32_1 : i32, i32, i32
  }
  func.func @transform_3(%arg0: i32, %arg1: i32) -> (i32, i32, i32) {
    %c0_i32 = arith.constant 0 : i32
    %c0_i32_0 = arith.constant 0 : i32
    %c0_i32_1 = arith.constant 0 : i32
    %c0_i32_2 = arith.constant 0 : i32
    return %c0_i32, %c0_i32_0, %c0_i32_1 : i32, i32, i32
  }
  func.func @transform_4(%arg0: i32, %arg1: i32) -> (i32, i32, i32) {
    %c0_i32 = arith.constant 0 : i32
    %c0_i32_0 = arith.constant 0 : i32
    %c0_i32_1 = arith.constant 0 : i32
    %c0_i32_2 = arith.constant 0 : i32
    return %c0_i32, %c0_i32_0, %c0_i32_1 : i32, i32, i32
  }
  func.func @transform_5(%arg0: i32, %arg1: i32) -> (i32, i32) {
    %c0_i32 = arith.constant 0 : i32
    %c0_i32_0 = arith.constant 0 : i32
    %c0_i32_1 = arith.constant 0 : i32
    return %c0_i32, %c0_i32_0 : i32, i32
  }
  func.func @transform_6(%arg0: i32, %arg1: i32) -> (i32, i32, i32) {
    %c0_i32 = arith.constant 0 : i32
    %c0_i32_0 = arith.constant 0 : i32
    %c0_i32_1 = arith.constant 0 : i32
    return %arg0, %c0_i32, %c0_i32_0 : i32, i32, i32
  }
}

</mosaic_0001>

<bundles_post_ra>
// kernel: tpu_custom_call.1
= control target key start
LH: loop header
LB: loop body
LE: loop exit
PB: predicated region body
PF: predicated region fallthrough
CT: control target
= control target key end

     0   :  { %s2559_s0 = inlined_call_operand.hbm [shape: f32[2,8,32], index: 0, kind: input, shape index: {}]   ;;  %s2560_s1 = inlined_call_operand.hbm [shape: f32[1,32,32], index: 1, kind: input, shape index: {}]   ;;  %s2561_s2 = inlined_call_operand.hbm [shape: f32[1,32,32], index: 2, kind: input, shape index: {}]   ;;  %s2562_s3 = inlined_call_operand.hbm [shape: f32[1,32,32], index: 3, kind: input, shape index: {}]   ;;  %s2563_s4 = inlined_call_operand.hbm [shape: f32[1,32,32], index: 4, kind: input, shape index: {}]   ;;  %s2564_s5 = inlined_call_operand.hbm [shape: f32[1,32], index: 5, kind: input, shape index: {}]   ;;  %s2565_s6 = inlined_call_operand.hbm [shape: f32[2,8,32], index: 6, kind: output, shape index: {}]  }
   0x1   :  { %2571 = sst [smem:[#allocation20_spill]] %s2560_s1 }
   0x2   :  { %11 = vsyncpa [#allocation4], 0 }
   0x3   :  { %13 = vsyncpa [#allocation4 + $0x1], 0 }
   0x4   :  { %14 = vsyncpa [#allocation7], 0 }
   0x5   :  { %15 = vsyncpa [#allocation10], 0 }
   0x6   :  { %16 = vsyncpa [#allocation13], 0 }
   0x7   :  { %17 = vsyncpa [#allocation5], 0 }
   0x8   :  { %19 = vsyncpa [#allocation5 + $0x1], 0  ;;  %s2145_s21 = smov 0   ;;  %s2147_s22 = smov 0  }
   0x9   :  { %s2149_s23 = smov 0   ;;  %s2151_s24 = smov 0  }
   0xa   :  { %s2153_s25 = smov 0   ;;  %s2155_s26 = smov 0  }
   0xb LB: > { %s2566_s27 = sadd.s32 4294967295, %s2090_s26   ;;  %p1504_p0 = scmp.ge.s32.totalorder %s2090_s26, 1  ;;  %s2090_s26 = sphi %s2155_s26, %s25_s26   ;;  %s2086_s25 = sphi %s2153_s25, %s2593_s25   ;;  %s2082_s24 = sphi %s2151_s24, %s2592_s24   ;;  %s2078_s23 = sphi %s2149_s23, %s2591_s23   ;;  %s2074_s22 = sphi %s2147_s22, %s2590_s22   ;;  %s2070_s21 = sphi %s2145_s21, %s2589_s21  }
   0xc   : > { %p2179_p1 = scmp.eq.s32.totalorder %s2566_s27, 0  ;;  %p199_p2 = scmp.lt.s32.totalorder %s2090_s26, 3 }
   0xd   : > { %s2092_s30 = smov [#allocation6]   ;;  %s2093_s9 = smov [#allocation9]  }
   0xe   : > { %s2572_s28 = scalar_select %p2179_p1, 1, 0 }
   0xf   : > { %p2184_p3 = pnand %p1504_p0, %p199_p2  ;;  %s211_s7 = sshll.u32 %s2092_s30, 4  ;;  %s2188_s7 = int_to_ptr.vmem [resolvable:$true] %s211_s7 }
  0x10   : > { %s237_s10 = sshll.u32 %s2093_s9, 4  ;;  %s2094_s11 = smov [#allocation8]   ;;  %s2199_s10 = int_to_ptr.vmem [resolvable:$true] %s237_s10 }
  0x11   : > { %s2573_s29 = scalar_select %p2184_p3, 1, 0 }
  0x12   : > { %p1710_p4 = pneg %p2184_p3  ;;  %s2201_s12 = sshll.u32 %s2094_s11, 4  ;;  %s225_s12 = int_to_ptr.vmem [resolvable:$true] %s2201_s12 }
  0x13   : > { %s2575_s1 = sld [smem:[#allocation20_spill]] }
  0x14   : > { %p2195_p6 = pnand %p1710_p4, %p2179_p1 }
  0x16   : > { %p2211_p8 = pneg %p2195_p6 }
  0x19   : > { %s1826_s15 = scalar_lea.hbm %s2575_s1, 512 }
  0x1a   : > { %p1827_p7 = scmp.ne.s32.totalorder %s2575_s1, %s1826_s15  ;;  %p1833_p11 = scmp.lt.u32.totalorder %s1826_s15, %s2575_s1 }
  0x1c   : > { %p1829_p9 = pnand %p2211_p8, %p1827_p7 }
  0x1e   : > { %p1830_p10 = pneg %p1829_p9 }
  0x20   : > { %p1835_p12 = pnand %p1833_p11, %p1830_p10 }
  0x22   : > { %1838 = shalt.err (!%p1835_p12)
}
  0x23   : > { %s1839_s30 = scalar_lea.vmem %s2188_s7, 512  ;;  %p1847_p4 = scmp.lt.s32.totalorder %s2188_s7, %s2188_s7 }
  0x24   : > { %p1840_p13 = scmp.ne.s32.totalorder %s2188_s7, %s1839_s30  ;;  %p1848_p5 = scmp.lt.s32.totalorder %s1839_s30, %s1839_s30 }
  0x26   : > { %p1842_p0 = pnand %p1840_p13, %p2211_p8  ;;  %p1849_p7 = por %p1848_p5, %p1847_p4 }
  0x28   : > { %p1843_p2 = pneg %p1842_p0 }
  0x2a   : > { %p1850_p9 = pnand %p1849_p7, %p1843_p2 }
  0x2c   : > { %1853 = shalt.err (!%p1850_p9)
}
  0x2d   : > { %s2095_s9 = smov 128   ;;  %s2096_s11 = smov 8  }
  0x2e   : > { %1713 = dma.hbm_to_vmem [thread:$0]  (!%p2195_p6), %s2575_s1, 512, %s2188_s7, [#allocation7], %s2095_s9, %s2095_s9, %s2096_s11  }
  0x2f   : > { %s1854_s17 = scalar_lea.hbm %s2562_s3, 512 }
  0x30   : > { %p1855_p5 = scmp.ne.s32.totalorder %s2562_s3, %s1854_s17  ;;  %p1861_p12 = scmp.lt.u32.totalorder %s1854_s17, %s2562_s3 }
  0x32   : > { %p1857_p10 = pnand %p1855_p5, %p2211_p8 }
  0x34   : > { %p1858_p11 = pneg %p1857_p10 }
  0x36   : > { %p1863_p13 = pnand %p1861_p12, %p1858_p11 }
  0x38   : > { %1866 = shalt.err (!%p1863_p13)
}
  0x39   : > { %s1867_s7 = scalar_lea.vmem %s2199_s10, 512  ;;  %p1875_p7 = scmp.lt.s32.totalorder %s2199_s10, %s2199_s10 }
  0x3a   : > { %p1868_p0 = scmp.ne.s32.totalorder %s2199_s10, %s1867_s7  ;;  %p1876_p9 = scmp.lt.s32.totalorder %s1867_s7, %s1867_s7 }
  0x3c   : > { %p1870_p2 = pnand %p1868_p0, %p2211_p8  ;;  %p1877_p5 = por %p1876_p9, %p1875_p7 }
  0x3e   : > { %p1871_p4 = pneg %p1870_p2 }
  0x40   : > { %p1878_p10 = pnand %p1877_p5, %p1871_p4 }
  0x42   : > { %1881 = shalt.err (!%p1878_p10)
}
  0x43   : > { %1719 = dma.hbm_to_vmem [thread:$0]  (!%p2195_p6), %s2562_s3, 512, %s2199_s10, [#allocation10], %s2095_s9, %s2095_s9, %s2096_s11  }
  0x44   : > { %s1882_s16 = scalar_lea.hbm %s2561_s2, 512 }
  0x45   : > { %p1883_p11 = scmp.ne.s32.totalorder %s2561_s2, %s1882_s16  ;;  %p1889_p0 = scmp.lt.u32.totalorder %s1882_s16, %s2561_s2 }
  0x47   : > { %p1885_p12 = pnand %p1883_p11, %p2211_p8 }
  0x49   : > { %p1886_p13 = pneg %p1885_p12 }
  0x4b   : > { %p1891_p2 = pnand %p1889_p0, %p1886_p13 }
  0x4d   : > { %1894 = shalt.err (!%p1891_p2)
}
  0x4e   : > { %s1895_s7 = scalar_lea.vmem %s225_s12, 512  ;;  %p1903_p5 = scmp.lt.s32.totalorder %s225_s12, %s225_s12 }
  0x4f   : > { %p1896_p4 = scmp.ne.s32.totalorder %s225_s12, %s1895_s7  ;;  %p1904_p10 = scmp.lt.s32.totalorder %s1895_s7, %s1895_s7 }
  0x51   : > { %p1898_p7 = pnand %p1896_p4, %p2211_p8  ;;  %p1905_p3 = por %p1904_p10, %p1903_p5 }
  0x53   : > { %p1899_p9 = pneg %p1898_p7 }
  0x55   : > { %p1906_p1 = pnand %p1905_p3, %p1899_p9 }
  0x57   : > { %1909 = shalt.err (!%p1906_p1)
}
  0x58   : > { %1716 = dma.hbm_to_vmem [thread:$0]  (!%p2195_p6), %s2561_s2, 512, %s225_s12, [#allocation7], %s2095_s9, %s2095_s9, %s2096_s11  }
  0x59   : > { %s2097_s13 = smov [#allocation11]   ;;  %s2098_s15 = smov [#allocation12]  }
  0x5a   : > { %s250_s14 = sshll.u32 %s2097_s13, 4  ;;  %s264_s16 = sshll.u32 %s2098_s15, 4  ;;  %s251_s14 = int_to_ptr.vmem [resolvable:$true] %s250_s14  ;;  %s265_s16 = int_to_ptr.vmem [resolvable:$true] %s264_s16 }
  0x5b   : > { %s1910_s20 = scalar_lea.hbm %s2563_s4, 512 }
  0x5c   : > { %p1911_p1 = scmp.ne.s32.totalorder %s2563_s4, %s1910_s20  ;;  %p1917_p12 = scmp.lt.u32.totalorder %s1910_s20, %s2563_s4 }
  0x5e   : > { %p1913_p3 = pnand %p1911_p1, %p2211_p8 }
  0x60   : > { %p1914_p11 = pneg %p1913_p3 }
  0x62   : > { %p1919_p13 = pnand %p1917_p12, %p1914_p11 }
  0x64   : > { %1922 = shalt.err (!%p1919_p13)
}
  0x65   : > { %s1923_s12 = scalar_lea.vmem %s251_s14, 512  ;;  %p1931_p7 = scmp.lt.s32.totalorder %s251_s14, %s251_s14 }
  0x66   : > { %p1924_p0 = scmp.ne.s32.totalorder %s251_s14, %s1923_s12  ;;  %p1932_p9 = scmp.lt.s32.totalorder %s1923_s12, %s1923_s12 }
  0x68   : > { %p1926_p2 = pnand %p1924_p0, %p2211_p8  ;;  %p1933_p5 = por %p1932_p9, %p1931_p7 }
  0x6a   : > { %p1927_p4 = pneg %p1926_p2 }
  0x6c   : > { %p1934_p10 = pnand %p1933_p5, %p1927_p4 }
  0x6e   : > { %1937 = shalt.err (!%p1934_p10)
}
  0x6f   : > { %1722 = dma.hbm_to_vmem [thread:$0]  (!%p2195_p6), %s2563_s4, 512, %s251_s14, [#allocation10], %s2095_s9, %s2095_s9, %s2096_s11  }
  0x70   : > { %s1938_s17 = scalar_lea.hbm %s2564_s5, 16 }
  0x71   : > { %p1939_p1 = scmp.ne.s32.totalorder %s2564_s5, %s1938_s17  ;;  %p1945_p12 = scmp.lt.u32.totalorder %s1938_s17, %s2564_s5 }
  0x73   : > { %p1941_p3 = pnand %p1939_p1, %p2211_p8 }
  0x75   : > { %p1942_p11 = pneg %p1941_p3 }
  0x77   : > { %p1947_p13 = pnand %p1945_p12, %p1942_p11 }
  0x79   : > { %1950 = shalt.err (!%p1947_p13)
}
  0x7a   : > { %s1951_s10 = scalar_lea.vmem %s265_s16, 16  ;;  %s1958_s9 = scalar_lea.vmem %s265_s16, 32 }
  0x7b   : > { %p1952_p0 = scmp.ne.s32.totalorder %s265_s16, %s1951_s10  ;;  %p1959_p7 = scmp.lt.s32.totalorder %s265_s16, %s265_s16 }
  0x7c   : > { %p1960_p9 = scmp.lt.s32.totalorder %s1958_s9, %s1951_s10 }
  0x7d   : > { %p1954_p2 = pnand %p1952_p0, %p2211_p8 }
  0x7e   : > { %p1961_p5 = por %p1960_p9, %p1959_p7 }
  0x7f   : > { %p1955_p4 = pneg %p1954_p2 }
  0x81   : > { %p1962_p10 = pnand %p1961_p5, %p1955_p4 }
  0x83   : > { %1965 = shalt.err (!%p1962_p10)
}
  0x84   : > { %1725 = dma.hbm_to_vmem [thread:$0]  (!%p2195_p6), %s2564_s5, 16, %s265_s16, [#allocation13]  }
  0x85   : > { %s1503_s18 = sadd.s32 4294967294, %s2090_s26   ;;  %s37_s12 = sadd.s32 1, %s2086_s25 }
  0x86   : > { %s44_s8 = sadd.s32 1, %s2078_s23  ;;  %p39_p8 = scmp.ge.s32.totalorder %s37_s12, 2 }
  0x87   : > { %p51_p1 = scmp.ne.s32.totalorder %s2078_s23, %s2074_s22  ;;  %p52_p3 = scmp.eq.s32.totalorder %s2090_s26, 0 }
  0x88   : > { %p57_p11 = scmp.ne.s32.totalorder %s2074_s22, %s2070_s21  ;;  %s2595_s12 = smov (%p39_p8, %s37_s12), 0 }
  0x89   : > { %p2332_p12 = por %p52_p3, %p51_p1  ;;  %p2578_p13 = scmp.ne.s32.totalorder %s2572_s28, 0 }
  0x8a   : > { %s41_s27 = ssub.s32 %s2086_s25, %s2595_s12  ;;  %s2580_s13 = sadd.s32 4294967295, %s2090_s26  }
  0x8b   : > { %p2338_p6 = por %p2578_p13, %p57_p11  ;;  %p186_p0 = scmp.eq.s32.totalorder %s2580_s13, 1 }
  0x8c   : > { %p42_p2 = scmp.eq.s32.totalorder %s41_s27, 0  ;;  %p192_p4 = scmp.eq.s32.totalorder %s1503_s18, 1 }
  0x8d   : > { %p2346_p7 = por %p186_p0, %p51_p1  ;;  %p1739_p9 = scmp.lt.s32.totalorder %s2090_s26, 2 }
  0x8e   : > { %s2352_s17 = scalar_select %p42_p2, %s2078_s23, %s44_s8  }
  0x8f   : > { %s2581_s15 = scalar_select %p2346_p7, 1, 0 }
  0x90   : > { %p2354_p5 = por %p192_p4, %p57_p11  ;;  %s275_s20 = sand.u32 1, %s2078_s23  }
  0x91   : > { %s1511_s30 = sshll.u32 %s275_s20, 3  ;;  %s1512_s7 = sshll.u32 %s2086_s25, 7 }
  0x92   : > { %s2582_s19 = scalar_select %p2354_p5, 1, 0 }
  0x93   : > { %s2363_s11 = scalar_lea.hbm %s2559_s0, %s1512_s7  ;;  %s279_s14 = scalar_lea.vmem [#allocation3], %s1511_s30 }
  0x94   : > { %s286_s18 = sshll.u32 %s279_s14, 4  ;;  %p2369_p10 = pnand %p1739_p9, %p2332_p12  ;;  %s2365_s18 = int_to_ptr.vmem [resolvable:$true] %s286_s18 }
  0x95   : > { %s276_s27 = scalar_lea.sflag [#allocation4], %s275_s20  ;;  %s1966_s13 = scalar_lea.hbm %s2363_s11, 128 }
  0x96   : > { %p1967_p8 = scmp.ne.s32.totalorder %s2363_s11, %s1966_s13  ;;  %p1968_p1 = pneg %p2369_p10 }
  0x97   : > { %s1971_s10 = scalar_lea.hbm %s2559_s0, 256  ;;  %p1972_p12 = scmp.lt.u32.totalorder %s2363_s11, %s2559_s0 }
  0x98   : > { %p1969_p3 = pnand %p1968_p1, %p1967_p8  ;;  %p1973_p13 = scmp.lt.u32.totalorder %s1971_s10, %s1966_s13 }
  0x99   : > { %p1975_p2 = scmp.lt.u32.totalorder %s1966_s13, %s2363_s11 }
  0x9a   : > { %p1970_p11 = pneg %p1969_p3  ;;  %p1974_p0 = por %p1973_p13, %p1972_p12 }
  0x9c   : > { %p1976_p4 = por %p1975_p2, %p1974_p0 }
  0x9e   : > { %p1977_p9 = pnand %p1976_p4, %p1970_p11 }
  0xa0   : > { %1980 = shalt.err (!%p1977_p9)
}
  0xa1   : > { %s1981_s20 = scalar_lea.vmem %s2365_s18, 128  ;;  %s2099_s14 = smov [#allocation3]  }
  0xa2   : > { %p1982_p8 = scmp.ne.s32.totalorder %s2365_s18, %s1981_s20  ;;  %s1986_s30 = sshll.u32 %s2099_s14, 4  ;;  %s1987_s30 = int_to_ptr.vmem [resolvable:$false] %s1986_s30 }
  0xa3   : > { %s1988_s7 = scalar_lea.vmem %s1987_s30, 256  ;;  %p1989_p7 = scmp.lt.s32.totalorder %s2365_s18, %s1987_s30 }
  0xa4   : > { %p1984_p3 = pnand %p1982_p8, %p1968_p1  ;;  %p1990_p12 = scmp.lt.s32.totalorder %s1988_s7, %s1981_s20 }
  0xa6   : > { %p1985_p5 = pneg %p1984_p3  ;;  %p1991_p13 = por %p1990_p12, %p1989_p7 }
  0xa8   : > { %p1992_p0 = pnand %p1991_p13, %p1985_p5 }
  0xaa   : > { %1995 = shalt.err (!%p1992_p0)
}
  0xab   : > { %1729 = dma.hbm_to_vmem [thread:$0]  (!%p2369_p10), %s2363_s11, 128, %s2365_s18, %s276_s27  }
  0xac   : > { %p2584_p11 = scmp.ne.s32.totalorder %s2573_s29, 0 }
  0xad   : > { %s2401_s13 = sand.u32 (!%p2584_p11), 1, %s2074_s22  }
  0xae   : > { %295 = sbr.rel (%p2584_p11) target bundleno = 1736 (0x6c8), region = 44  ;;  %s1514_s10 = sshll.u32 (!%p2584_p11), %s2401_s13, 3 }
  0xaf   : > { %s298_s1 = scalar_lea.sflag (!%p2584_p11), [#allocation4], %s2401_s13  ;;  %s2407_s9 = scalar_lea.vmem (!%p2584_p11), [#allocation3], %s1514_s10 }
  0xb5   : > { %2049 = dma.done.wait (%p2338_p6), %s298_s1, 128  }
  0xb6   : > { %2051 = vsyncadd (%p2338_p6), %s298_s1, 4294967168  ;;  %p2585_p7 = scmp.ne.s32.totalorder %s2572_s28, 0 }
  0xb8   : > { %2053 = dma.done.wait (%p2585_p7), [#allocation7], 1024  }
  0xb9   : > { %2055 = vsyncadd (%p2585_p7), [#allocation7], 4294966272 }
  0xba   : > { %2057 = dma.done.wait (%p2585_p7), [#allocation10], 1024  }
  0xbb   : > { %2059 = vsyncadd (%p2585_p7), [#allocation10], 4294966272 }
  0xbc   : > { %2061 = dma.done.wait (%p2585_p7), [#allocation13], 16  }
  0xbd   : > { %2063 = vsyncadd (%p2585_p7), [#allocation13], 4294967280  ;;  %vm357_vm0 = vcmask 261120   ;;  %v2100_v0 = vmov 0.0|0.0   ;;  %v2101_v1 = vmov 0.0   ;;  %vm2102_vm1 = vmmov 0  }
  0xbe   : > { %1662 = vmatprep.subr.bf16.mxu0 %v2100_v0  ;;  %1668 = vmatprep.subr.bf16.mxu1 %v2100_v0  ;;  %1259 = vst.msk [vmem:[#allocation2] sm:$0xff] %vm357_vm0, %v2101_v1  ;;  %v353_v2 = vld [vmem:[#allocation6] sm:$0xff]  ;;  %v354_v3 = vld [vmem:[#allocation6 + $0x8] sm:$0xff]  ;;  %v355_v7 = vld [vmem:[#allocation6 + $0x10] sm:$0xff]  ;;  %vm581_vm2 = vcmask 64512   ;;  %s2103_s28 = smov 120  }
  0xbf   : > { %1586 = vmatprep.mubr.msk.f32.mxu0 %vm2102_vm1, %v2101_v1  ;;  %1597 = vmatprep.mubr.msk.f32.mxu1 %vm2102_vm1, %v2101_v1  ;;  %v432_v4 = vld [vmem:[#allocation8] sm:$0xff]  ;;  %v1663_v5 = vpack.c.bf16 %v354_v3, %v353_v2  ;;  %v433_v6 = vld [vmem:[#allocation8 + $0x8] sm:$0xff]  ;;  %v356_v8 = vld [vmem:[#allocation6 + $0x18] sm:$0xff]  ;;  %s2104_s29 = smov 112   ;;  %s2105_s16 = smov 104   ;;  %vm1251_vm3 = vcmask 130048  }
  0xc0   : > { %v1669_v9 = vpack.c.bf16 %v433_v6, %v432_v4  ;;  %v434_v10 = vld [vmem:[#allocation8 + $0x10] sm:$0xff]  ;;  %v435_v11 = vld [vmem:[#allocation8 + $0x18] sm:$0xff]  ;;  %v1666_v12 = vpack.c.bf16 %v356_v8, %v355_v7  ;;  %v507_v15 = vld [vmem:[#allocation9] sm:$0xff]  ;;  %s2106_s11 = smov 8   ;;  %s2107_s18 = smov 16   ;;  %vm1253_vm4 = vcmask 195584  }
  0xc1   : > { %1664 = vmatpush3.bf16.msra.mxu0 %v1663_v5  ;;  %v1672_v13 = vpack.c.bf16 %v435_v11, %v434_v10  ;;  %v350_v14 = vld [vmem:[%s2407_s9] sm:$0xff]  ;;  %v508_v16 = vld [vmem:[#allocation9 + $0x8] sm:$0xff]  ;;  %s2108_s8 = smov 24   ;;  %s1539_s27 = sshll.u32 %s2082_s24, 7 }
  0xc2   : > { %1670 = vmatpush3.bf16.msra.mxu1 %v1669_v9  ;;  %1665 = vmatprep.subr.bf16.mxu0 %v2100_v0  ;;  %v509_v17 = vld [vmem:[#allocation9 + $0x10] sm:$0xff]  ;;  %v1675_v18 = vpack.c.bf16 %v508_v16, %v507_v15  ;;  %v510_v19 = vld [vmem:[#allocation9 + $0x18] sm:$0xff]  ;;  %v1262_v9 = vld [vmem:[#allocation11] sm:$0xff]  ;;  %s349_s20 = scalar_lea.vmem [#allocation14], %s1514_s10  ;;  %s2509_s1 = scalar_lea.hbm %s2565_s6, %s1539_s27 }
  0xc3   : > { %1671 = vmatprep.subr.bf16.mxu1 %v2100_v0  ;;  %v1678_v20 = vpack.c.bf16 %v510_v19, %v509_v17  ;;  %v1263_v10 = vld [vmem:[#allocation11 + $0x8] sm:$0xff]  ;;  %s1368_s14 = sshll.u32 %s349_s20, 4  ;;  %s1355_s9 = scalar_lea.sflag [#allocation5], %s2401_s13  ;;  %s2511_s14 = int_to_ptr.vmem [resolvable:$true] %s1368_s14 }
  0xc4   : > { %p2586_p5 = scmp.ne.s32.totalorder %s2581_s15, 0  ;;  %s2109_s24 = smov [#allocation14]  }
  0xc5   : > { %1667 = vmatpush3.bf16.msra.mxu0 %v1666_v12  ;;  %v1681_v12 = vpack.c.bf16 %v1263_v10, %v1262_v9  ;;  %s2000_s10 = sshll.u32 %s2109_s24, 4  ;;  %s2001_s10 = int_to_ptr.vmem [resolvable:$false] %s2000_s10 }
  0xc6   : > { %1673 = vmatpush3.bf16.msra.mxu1 %v1672_v13  ;;  %1674 = vmatprep.subr.bf16.mxu0 %v2100_v0  ;;  %v1264_v13 = vld [vmem:[#allocation11 + $0x10] sm:$0xff]  ;;  %p2003_p2 = scmp.lt.s32.totalorder %s2511_s14, %s2001_s10 }
  0xc7   : > { %1611 = vmatprep.subr.mxu1 %v2101_v1 }
  0xc8   : > { %1587 = vmatmul.mubr.msk.f32.vlgmr.msra.gmra.mrb[0].mxu0 %vm357_vm0, %v350_v14 }
  0xc9   : > { %1598 = vmatmul.mubr.msk.f32.vlgmr.msra.gmra.mrb[0].mxu1 %vm357_vm0, %v350_v14  ;;  %1608 = vmatprep.mubr.msk.f32.mxu0 %vm2102_vm1, %v2101_v1 }
  0xca   : > { %1613 = vmatprep.mubr.msk.f32.mxu1 %vm2102_vm1, %v2101_v1  ;;  %1676 = vmatpush3.bf16.msra.mxu0 %v1675_v18 }
  0xcb   : > { %1677 = vmatprep.subr.bf16.mxu0 %v2100_v0 }
  0xce   : > { %1679 = vmatpush3.bf16.msra.mxu0 %v1678_v20 }
  0xcf   : > { %1631 = vmatprep.subr.mxu0 %v2101_v1 }
  0xd1   : > { %1609 = vmatmul.mubr.msk.f32.vlgmr.msra.gmra.mrb[2].mxu0 %vm357_vm0, %v350_v14  ;;  %v1265_v14 = vld [vmem:[#allocation11 + $0x18] sm:$0xff] }
  0xd2   : > { %1633 = vmatprep.mubr.msk.f32.mxu0 %vm2102_vm1, %v2101_v1  ;;  %v1684_v16 = vpack.c.bf16 %v1265_v14, %v1264_v13 }
 0x19b   : > { %v427_v21 = vpop.f32.mrb[0].mxu0 }
 0x19c   : > { %v502_v22 = vpop.f32.mrb[0].mxu1  ;;  %742 = vrot.lane.b32.xlu1 %v427_v21, %s2103_s28  ;;  %v1588_v23 = vpop.f32.mrb[1].mxu0 }
 0x19d   : > { %v1599_v24 = vpop.f32.mrb[1].mxu1  ;;  %1612 = vmatpush3.xpose.msk.msra.mxu1 %vm581_vm2, %v502_v22 }
 0x19e   : > { %1616 = vmatprep.subr.mxu1 %v2101_v1 }
 0x1a0   : > { %1614 = vmatmul.mubr.msk.f32.vlgmr.msra.gmra.mrb[2].mxu1 %vm581_vm2, %v427_v21  ;;  %910 = vrot.lane.b32.xlu1 %v502_v22, %s2104_s29 }
 0x1a1   : > { %1618 = vmatprep.mubr.msk.f32.mxu1 %vm2102_vm1, %v2101_v1 }
 0x1a4   : > { %908 = vrot.lane.b32.xlu1 %v427_v21, %s2104_s29  ;;  %v577_v25 = vpop.f32.mrb[2].mxu0 }
 0x1a5   : > { %v1610_v26 = vpop.f32.mrb[3].mxu0  ;;  %1617 = vmatpush3.msra.mxu1 %v577_v25 }
 0x1a6   : > { %1621 = vmatprep.subr.mxu1 %v2101_v1 }
 0x1a8   : > { %1075 = vrot.lane.b32.xlu1 %v502_v22, %s2105_s16 }
 0x1ac   : > { %1073 = vrot.lane.b32.xlu1 %v427_v21, %s2105_s16 }
 0x1b0   : > { %995 = vrot.lane.b32.xlu1 %v577_v25, %s2104_s29  ;;  %s2002_s29 = scalar_lea.vmem %s2001_s10, 256 }
 0x20e   : > { %v743_v27 = vpop.permute.xlu1 %742 }
 0x212   : > { %v911_v28 = vpop.permute.xlu1 %910 }
 0x213   : > { %1632 = vmatpush3.xpose.msk.msra.mxu0 %vm581_vm2, %v911_v28 }
 0x214   : > { %1641 = vmatprep.subr.mxu0 %v2101_v1 }
 0x216   : > { %v909_v29 = vpop.permute.xlu1 %908 }
 0x217   : > { %1634 = vmatmul.mubr.msk.f32.vlgmr.msra.gmra.mrb[4].mxu0 %vm581_vm2, %v909_v29 }
 0x218   : > { %1643 = vmatprep.mubr.msk.f32.mxu0 %vm2102_vm1, %v2101_v1 }
 0x21a   : > { %v1076_v30 = vpop.permute.xlu1 %1075 }
 0x21b   : > { %1642 = vmatpush3.xpose.msk.msra.mxu0 %vm581_vm2, %v1076_v30 }
 0x21c   : > { %1680 = vmatprep.subr.bf16.mxu0 %v2100_v0 }
 0x21e   : > { %v1074_v31 = vpop.permute.xlu1 %1073 }
 0x21f   : > { %1644 = vmatmul.mubr.msk.f32.vlgmr.msra.gmra.mrb[6].mxu0 %vm581_vm2, %v1074_v31 }
 0x220   : > { %1659 = vmatprep.mubr.msk.f32.mxu0 %vm2102_vm1, %v2101_v1  ;;  %1682 = vmatpush3.bf16.msra.mxu0 %v1681_v12 }
 0x221   : > { %1683 = vmatprep.subr.bf16.mxu0 %v2100_v0 }
 0x222   : > { %v996_v57 = vpop.permute.xlu1 %995 }
 0x224   : > { %1685 = vmatpush3.bf16.msra.mxu0 %v1684_v16 }
 0x273   : > { %v654_v32 = vpop.f32.mrb[2].mxu1 }
 0x274   : > { %v1615_v33 = vpop.f32.mrb[3].mxu1  ;;  %v658_v34 = vsel %vm581_vm2, %v654_v32, -inf }
 0x275   : > { %659 = vmax.xlane.f32.xlu0 %v658_v34 }
 0x28b   : > { %744 = vrot.lane.b32.xlu0 %v502_v22, %s2103_s28 }
 0x2ea   : > { %v982_v35 = vpop.f32.mrb[4].mxu0 }
 0x2eb   : > { %v1635_v36 = vpop.f32.mrb[5].mxu0  ;;  %v986_v37 = vsel %vm581_vm2, %v982_v35, -inf }
 0x2ec   : > { %987 = vmax.xlane.f32.xlu0 %v986_v37  ;;  %v1260_v36 = vld [vmem:[#allocation2] sm:$0xff] }
 0x2f2   : > { %v1147_v38 = vpop.f32.mrb[6].mxu0 }
 0x2f3   : > { %v1645_v39 = vpop.f32.mrb[7].mxu0  ;;  %v1151_v40 = vsel %vm581_vm2, %v1147_v38, -inf }
 0x2f4   : > { %1152 = vmax.xlane.f32.xlu1 %v1151_v40  ;;  %v1537_v40 = vld [vmem:[#allocation12] ss:$0 sm:$0xff] }
 0x302   : > { %v660_v41 = vpop.xlane.xlu0 %659  ;;  %830 = vrot.lane.b32.xlu0 %v577_v25, %s2103_s28  ;;  %s1996_s28 = scalar_lea.vmem %s2511_s14, 128 }
 0x303   : > { %v661_v42 = vsub.f32 %v654_v32, %v660_v41  ;;  %p1997_p6 = scmp.ne.s32.totalorder %s2511_s14, %s1996_s28  ;;  %p2004_p4 = scmp.lt.s32.totalorder %s2002_s29, %s1996_s28 }
 0x305   : > { %v662_v43 = vmul.f32 1.442695, %v661_v42  ;;  %p1998_p10 = pnand %p1997_p6, %p2586_p5  ;;  %p2005_p9 = por %p2004_p4, %p2003_p2 }
 0x306   : > { %v745_v45 = vpop.permute.xlu0 %744 }
 0x307   : > { %1810 = vpow2.f32 %v662_v43  ;;  %p1999_p1 = pneg %p1998_p10 }
 0x309   : > { %p2006_p8 = pnand %p2005_p9, %p1999_p1 }
 0x311   : > { %v1811_v44 = vpop.eup %1810 }
 0x312   : > { %1619 = vmatmul.mubr.msk.f32.vlgmr.msra.gmra.mrb[4].mxu1 %vm581_vm2, %v1811_v44  ;;  %v664_v7 = vsel %vm581_vm2, %v1811_v44, 0.0 }
 0x313   : > { %1622 = vmatpush3.xpose.msk.msra.mxu1 %vm581_vm2, %v745_v45  ;;  %1623 = vmatprep.mubr.msk.f32.mxu1 %vm2102_vm1, %v2101_v1 }
 0x314   : > { %1626 = vmatprep.subr.mxu1 %v2101_v1 }
 0x316   : > { %1624 = vmatmul.mubr.msk.f32.vlgmr.msra.gmra.mrb[6].mxu1 %vm581_vm2, %v743_v27 }
 0x317   : > { %1628 = vmatprep.mubr.msk.f32.mxu1 %vm2102_vm1, %v2101_v1 }
 0x379   : > { %v988_v46 = vpop.xlane.xlu0 %987 }
 0x37a   : > { %v989_v47 = vsub.f32 %v982_v35, %v988_v46 }
 0x37c   : > { %v990_v54 = vmul.f32 1.442695, %v989_v47 }
 0x37d   : > { %v831_v48 = vpop.permute.xlu0 %830 }
 0x37e   : > { %1627 = vmatpush3.msra.mxu1 %v831_v48  ;;  %1812 = vpow2.f32 %v990_v54 }
 0x37f   : > { %1636 = vmatprep.subr.mxu1 %v2101_v1 }
 0x381   : > { %v1153_v58 = vpop.xlane.xlu1 %1152 }
 0x382   : > { %v1154_v59 = vsub.f32 %v1147_v38, %v1153_v58 }
 0x384   : > { %v1155_v62 = vmul.f32 1.442695, %v1154_v59 }
 0x388   : > { %v1813_v55 = vpop.eup %1812 }
 0x389   : > { %v992_v56 = vsel %vm581_vm2, %v1813_v55, 0.0 }
 0x3e5   : > { %v2482_v49 = vpop.f32.mrb[4].mxu1 }
 0x3e6   : > { %v1620_v50 = vpop.f32.mrb[5].mxu1 }
 0x3e9   : > { %v816_v51 = vpop.f32.mrb[6].mxu1 }
 0x3ea   : > { %v1625_v52 = vpop.f32.mrb[7].mxu1  ;;  %v820_v53 = vsel %vm581_vm2, %v816_v51, -inf }
 0x3eb   : > { %821 = vmax.xlane.f32.xlu1 %v820_v53 }
 0x3fc   : > { %1160 = vrot.lane.b32.xlu1 %v577_v25, %s2105_s16 }
 0x420   : > { %993 = vadd.xlane.f32.xlu1 %v992_v56 }
 0x478   : > { %v822_v60 = vpop.xlane.xlu1 %821 }
 0x479   : > { %v823_v61 = vsub.f32 %v816_v51, %v822_v60 }
 0x47b   : > { %v824_v63 = vmul.f32 1.442695, %v823_v61 }
 0x47c   : > { %v1161_v5 = vpop.permute.xlu1 %1160 }
 0x47d   : > { %1814 = vpow2.f32 %v824_v63 }
 0x47e   : > { %1816 = vpow2.f32 %v1155_v62 }
 0x487   : > { %v1815_v2 = vpop.eup %1814 }
 0x488   : > { %1629 = vmatmul.mubr.msk.f32.vlgmr.msra.gmra.mrb[8].mxu1 %vm581_vm2, %v1815_v2  ;;  %v826_v3 = vsel %vm581_vm2, %v1815_v2, 0.0  ;;  %v1817_v4 = vpop.eup %1816 }
 0x489   : > { %1637 = vmatpush3.msra.mxu1 %v996_v57  ;;  %827 = vadd.xlane.f32.xlu0 %v826_v3  ;;  %v1157_v6 = vsel %vm581_vm2, %v1817_v4, 0.0 }
 0x48a   : > { %1638 = vmatprep.mubr.msk.f32.mxu1 %vm2102_vm1, %v2101_v1  ;;  %1646 = vmatprep.subr.mxu1 %v2101_v1 }
 0x48c   : > { %1639 = vmatmul.mubr.msk.f32.vlgmr.msra.gmra.mrb[10].mxu1 %vm581_vm2, %v1813_v55 }
 0x48d   : > { %1647 = vmatpush3.msra.mxu1 %v1161_v5  ;;  %1158 = vadd.xlane.f32.xlu0 %v1157_v6 }
 0x48e   : > { %1648 = vmatprep.mubr.msk.f32.mxu1 %vm2102_vm1, %v2101_v1 }
 0x490   : > { %1649 = vmatmul.mubr.msk.f32.vlgmr.msra.gmra.mrb[12].mxu1 %vm581_vm2, %v1817_v4 }
 0x491   : > { %665 = vadd.xlane.f32.xlu0 %v664_v7 }
 0x4ad   : > { %v994_v11 = vpop.xlane.xlu1 %993 }
 0x516   : > { %v828_v8 = vpop.xlane.xlu0 %827 }
 0x517   : > { %1818 = vrcp.f32 %v828_v8 }
 0x518   : > { %1820 = vrcp.f32 %v994_v11 }
 0x51a   : > { %v1159_v15 = vpop.xlane.xlu0 %1158 }
 0x51b   : > { %1822 = vrcp.f32 %v1159_v15 }
 0x51e   : > { %v666_v27 = vpop.xlane.xlu0 %665 }
 0x51f   : > { %1824 = vrcp.f32 %v666_v27 }
 0x521   : > { %v1819_v1 = vpop.eup %1818 }
 0x522   : > { %v1821_v20 = vpop.eup %1820 }
 0x525   : > { %v1823_v24 = vpop.eup %1822 }
 0x529   : > { %v1825_v28 = vpop.eup %1824 }
 0x52a   : > { %v741_v30 = vmul.f32 %v1825_v28, %v2482_v49 }
 0x55b   : > { %v902_v17 = vpop.f32.mrb[8].mxu1 }
 0x55c   : > { %v907_v18 = vmul.f32 %v1819_v1, %v902_v17  ;;  %v1630_v19 = vpop.f32.mrb[9].mxu1 }
 0x55e   : > { %1239 = vrot.lane.b32.xlu1 %v907_v18, %s2106_s11 }
 0x55f   : > { %v1067_v21 = vpop.f32.mrb[10].mxu1 }
 0x560   : > { %v1072_v22 = vmul.f32 %v1821_v20, %v1067_v21  ;;  %v1640_v23 = vpop.f32.mrb[11].mxu1 }
 0x562   : > { %1243 = vrot.lane.b32.xlu0 %v1072_v22, %s2107_s18 }
 0x563   : > { %v1232_v0 = vpop.f32.mrb[12].mxu1 }
 0x564   : > { %v1237_v25 = vmul.f32 %v1823_v24, %v1232_v0  ;;  %v1650_v26 = vpop.f32.mrb[13].mxu1 }
 0x566   : > { %1247 = vrot.lane.b32.xlu1 %v1237_v25, %s2108_s8 }
 0x5d0   : > { %v1240_v29 = vpop.permute.xlu1 %1239 }
 0x5d1   : > { %v1250_v32 = vsel %vm581_vm2, %v741_v30, %v1240_v29 }
 0x5d4   : > { %v1244_v31 = vpop.permute.xlu0 %1243 }
 0x5d5   : > { %v1252_v33 = vsel %vm1251_vm3, %v1250_v32, %v1244_v31 }
 0x5d8   : > { %v1248_v34 = vpop.permute.xlu1 %1247 }
 0x5d9   : > { %v1254_v35 = vsel %vm1253_vm4, %v1252_v33, %v1248_v34 }
 0x5da   : > { %1660 = vmatmul.mubr.msk.f32.vlgmr.msra.gmra.mrb[8].mxu0 %vm357_vm0, %v1254_v35 }
 0x6ad   : > { %v1335_v37 = vpop.f32.mrb[8].mxu0 }
 0x6ae   : > { %v1339_v38 = vadd.f32 %v1335_v37, %v1260_v36  ;;  %v1661_v39 = vpop.f32.mrb[9].mxu0 }
 0x6b0   : > { %1340 = vst.msk [vmem:[#allocation2] sm:$0xff] %vm357_vm0, %v1339_v38 }
 0x6b7   : > { %v1344_v41 = vld [vmem:[#allocation2] sm:$0xff] }
 0x6b8   : > { %v1352_v42 = vadd.f32 %v1537_v40, %v1344_v41 }
 0x6ba   : > { %1353 = vst.msk [vmem:[%s349_s20] sm:$0xff] %vm357_vm0, %v1352_v42 }
 0x6bb   : > { %2009 = shalt.err (!%p2006_p8)
}
 0x6bc   : > { %s2010_s13 = scalar_lea.hbm %s2509_s1, 128  ;;  %s2014_s18 = scalar_lea.hbm %s2565_s6, 256 }
 0x6bd   : > { %p2011_p3 = scmp.ne.s32.totalorder %s2509_s1, %s2010_s13  ;;  %p2015_p0 = scmp.lt.u32.totalorder %s2509_s1, %s2565_s6 }
 0x6be   : > { %p2016_p11 = scmp.lt.u32.totalorder %s2014_s18, %s2010_s13  ;;  %p2018_p6 = scmp.lt.u32.totalorder %s2010_s13, %s2509_s1 }
 0x6bf   : > { %p2012_p12 = pnand %p2011_p3, %p2586_p5 }
 0x6c0   : > { %p2017_p7 = por %p2016_p11, %p2015_p0 }
 0x6c1   : > { %p2013_p13 = pneg %p2012_p12 }
 0x6c2   : > { %p2019_p10 = por %p2018_p6, %p2017_p7 }
 0x6c4   : > { %p2020_p1 = pnand %p2019_p10, %p2013_p13 }
 0x6c6   : > { %2023 = shalt.err (!%p2020_p1)
}
 0x6c7   : > { %1708 = dma.vmem_to_hbm [thread:$0]  (%p2586_p5), %s2511_s14, 128, %s2509_s1, %s1355_s9  }
 0x6c8 PF: > { %s1380_s20 = sand.u32 1, %s2070_s21   ;;  %p2587_p2 = scmp.ne.s32.totalorder %s2582_s19, 0 }
 0x6c9   : > { %p2588_p4 = scmp.ge.s32.totalorder %s2090_s26, 2  ;;  %s1381_s30 = scalar_lea.sflag [#allocation5], %s1380_s20 }
 0x6cb   : > { %p1731_p9 = pnand %p2588_p4, %p2587_p2 }
 0x6cd   : > { %2065 = dma.done.wait (!%p1731_p9), %s1381_s30, 128  }
 0x6ce   : > { %2067 = vsyncadd (!%p1731_p9), %s1381_s30, 4294967168  ;;  %s25_s26 = sadd.s32 1, %s2090_s26   ;;  %s2589_s21 = smov %s2074_s22 }
 0x6cf   : > { %p22_p8 = scmp.ge.s32.totalorder %s25_s26, 4   ;;  %s2590_s22 = smov %s2078_s23 }
 0x6d0   : > { %s2591_s23 = smov %s2352_s17  ;;  %s2592_s24 = smov %s2086_s25 }
 0x6d1   : > { %s2593_s25 = smov %s2595_s12  ;;  %24 = sbr.rel (!%p22_p8) target bundleno = 11 (0xb), region = 121 }
 0x6d8   :  { %1386 = vsyncpa [#allocation4], 1 }
 0x6d9   :  { %1388 = vsyncpa [#allocation4 + $0x1], 1 }
 0x6da   :  { %1389 = vsyncpa [#allocation7], 1 }
 0x6db   :  { %1390 = vsyncpa [#allocation10], 1 }
 0x6dc   :  { %1391 = vsyncpa [#allocation13], 1 }
 0x6dd   :  { %1392 = vsyncpa [#allocation5], 1 }
 0x6de   :  { %1394 = vsyncpa [#allocation5 + $0x1], 1 }

</bundles_post_ra>
